<compile_context>
chip_gen: v5e
topology: v5e:2x2
jax: 0.10.0
libtpu: 0.0.40
codegen_flags: <defaults>
</compile_context>

<pallas_src>
import jax
import jax.numpy as jnp
from jax.experimental import pallas as pl
from jax.experimental.pallas import tpu as pltpu

# Small, TPU-friendly stand-ins for config.bert_dim / config.gpt2_dim.
BERT_DIM = 128   # config.bert_dim
GPT2_DIM = 128   # config.gpt2_dim
BATCH = 2
SEQ = 8

# Below this many rows a standalone pallas_call is pure fixed overhead; let XLA
# fuse the linear+relu into the surrounding graph instead.
_XLA_FALLBACK_MAX_ROWS = 1024


def linear_relu_kernel(x_ref, w_ref, b_ref, o_ref):
    # x_ref: (TM, D_in) f32   w_ref: (D_in, D_out) bf16   b_ref: (1, D_out) f32
    # o_ref: (TM, D_out) out_dtype
    x_bf = x_ref[...].astype(jnp.bfloat16)        # in-kernel cast (VPU, hidden under MXU)
    acc = jnp.dot(x_bf, w_ref[...], preferred_element_type=jnp.float32)
    acc = acc + b_ref[...]                        # bias broadcast rides a VALU slot
    o_ref[...] = jnp.maximum(acc, 0.0).astype(o_ref.dtype)


def _choose_tm(M, target=2048):
    """Row-tile size: big tiles to amortize per-step overhead; >=2 (even) grid
    steps when M is large so both v7x TensorCores get work; multiple of 16."""
    if M <= target:
        return M                                  # single full block (exempt from (8,128) rule)
    grid_m = max(2, pl.cdiv(M, target))
    if grid_m % 2:
        grid_m += 1                               # even step count -> clean 2-TC split on v7x
    tm = pl.cdiv(M, grid_m)
    tm = ((tm + 15) // 16) * 16                   # multiple of 16 (bf16-friendly sublane packing)
    return tm


def init_params(key, d_in=BERT_DIM, d_out=GPT2_DIM):
    """nn.Linear(bert_dim, gpt2_dim) init; weight stored (in, out) and cast to
    bf16 ONCE here (not per forward call)."""
    k_w, k_b = jax.random.split(key)
    bound = 1.0 / (d_in ** 0.5)
    w = jax.random.uniform(k_w, (d_in, d_out), dtype=jnp.float32,
                           minval=-bound, maxval=bound)
    b = jax.random.uniform(k_b, (d_out,), dtype=jnp.float32,
                           minval=-bound, maxval=bound)
    return w.astype(jnp.bfloat16), b, w           # (bf16 weight, f32 bias, f32 weight for ref)


def net_forward(cls_embedding, word_embeddings, sentiment_embedding, w_bf16, b,
                *, out_dtype=jnp.float32, use_pallas=None):
    """Mirrors Net.forward: only word_embeddings is used."""
    del cls_embedding, sentiment_embedding        # unused, exactly as in the PyTorch module
    B, S, D_in = word_embeddings.shape
    D_out = w_bf16.shape[1]
    M = B * S

    x2d = word_embeddings.reshape(M, D_in)        # keep f32; cast happens inside the kernel
    b2d = b.reshape(1, D_out).astype(jnp.float32)

    if use_pallas is None:
        use_pallas = M > _XLA_FALLBACK_MAX_ROWS
    if not use_pallas:
        # Small-M fallback: let XLA fuse it into the surrounding graph.
        y = jnp.maximum(
            jnp.dot(x2d.astype(jnp.bfloat16), w_bf16,
                    preferred_element_type=jnp.float32) + b2d, 0.0)
        return y.astype(out_dtype).reshape(B, S, D_out)

    tm = _choose_tm(M)
    grid_m = pl.cdiv(M, tm)

    out2d = pl.pallas_call(
        linear_relu_kernel,
        out_shape=jax.ShapeDtypeStruct((M, D_out), out_dtype),
        grid=(grid_m,),
        in_specs=[
            pl.BlockSpec((tm, D_in), lambda i: (i, 0)),      # activations: tiled over rows
            pl.BlockSpec((D_in, D_out), lambda i: (0, 0)),   # bf16 weight: resident across steps
            pl.BlockSpec((1, D_out), lambda i: (0, 0)),      # bias: resident across steps
        ],
        out_specs=pl.BlockSpec((tm, D_out), lambda i: (i, 0)),
        compiler_params=pltpu.CompilerParams(
            dimension_semantics=("parallel",),               # rows independent -> megacore sharding
            # no vmem_limit override: default scoped limit is ample for ~8 MiB of tiles
        ),
    )(x2d, w_bf16, b2d)

    return out2d.reshape(B, S, D_out)


def _reference(word_embeddings, w_bf16, b):
    """Same numerics as the kernel (bf16 inputs to the MXU, f32 accumulate)."""
    B, S, D_in = word_embeddings.shape
    x_bf = word_embeddings.reshape(B * S, D_in).astype(jnp.bfloat16)
    y = jnp.maximum(
        jnp.dot(x_bf, w_bf16, preferred_element_type=jnp.float32) + b, 0.0)
    return y.reshape(B, S, -1)


if __name__ == "__main__":
    key = jax.random.PRNGKey(0)
    k_cls, k_words, k_sent, k_param, k_big = jax.random.split(key, 5)

    # --- parameters (cast to bf16 once, at init) ---------------------------
    w_bf16, b, w_f32 = init_params(k_param)

    # --- toy-shape forward (forces the Pallas path so the kernel runs) -----
    cls_embedding = jax.random.normal(k_cls, (BATCH, BERT_DIM), dtype=jnp.float32)
    word_embeddings = jax.random.normal(k_words, (BATCH, SEQ, BERT_DIM), dtype=jnp.float32)
    sentiment_embedding = jax.random.normal(k_sent, (BATCH, BERT_DIM), dtype=jnp.float32)

    latent = net_forward(cls_embedding, word_embeddings, sentiment_embedding,
                         w_bf16, b, use_pallas=True)
    latent = jax.block_until_ready(latent)
    assert latent.shape == (BATCH, SEQ, GPT2_DIM)
    assert latent.dtype == jnp.float32

    ref = _reference(word_embeddings, w_bf16, b)
    assert jnp.allclose(latent, ref, atol=1e-3, rtol=1e-3)

    # Looser semantic sanity check against the pure-f32 PyTorch-equivalent math.
    ref_f32 = jnp.maximum(word_embeddings @ w_f32 + b, 0.0)
    assert jnp.allclose(latent, ref_f32, atol=5e-2, rtol=5e-2)

    # Fallback path (auto-selected at this small M) must match too.
    latent_fb = net_forward(cls_embedding, word_embeddings, sentiment_embedding, w_bf16, b)
    assert jnp.allclose(jax.block_until_ready(latent_fb), ref, atol=1e-3, rtol=1e-3)

    # --- multi-step / partial-tile sanity check (M=4128 -> 4 grid steps) ---
    Bb, Ss = 4, 1032
    big_words = jax.random.normal(k_big, (Bb, Ss, BERT_DIM), dtype=jnp.float32)
    big_latent = net_forward(jnp.zeros((Bb, BERT_DIM), jnp.float32), big_words,
                             jnp.zeros((Bb, BERT_DIM), jnp.float32), w_bf16, b)
    big_latent = jax.block_until_ready(big_latent)
    big_ref = _reference(big_words, w_bf16, b)
    assert jnp.allclose(big_latent, big_ref, atol=1e-3, rtol=1e-3)

    print("KERNEL_OK")
</pallas_src>

<mosaic_0001>
module attributes {stable_mosaic.version = 11 : i64} {
  func.func @linear_relu_kernel(%arg0: i32, %arg1: memref<16x128xf32, #tpu.memory_space<vmem>>, %arg2: memref<128x128xbf16, #tpu.memory_space<vmem>>, %arg3: memref<1x128xf32, #tpu.memory_space<vmem>>, %arg4: memref<16x128xf32, #tpu.memory_space<vmem>>) attributes {dimension_semantics = [#tpu.dimension_semantics<parallel>], iteration_bounds = array<i64: 1>, scalar_prefetch = 0 : i64, scratch_operands = 0 : i64, tpu.core_type = #tpu.core_type<tc>, window_params = [{transform_indices = @transform_0, window_bounds = array<i64: 16, 128>}, {pipeline_mode = #tpu.pipeline_mode<synchronous>, transform_indices = @transform_1, window_bounds = array<i64: 128, 128>}, {pipeline_mode = #tpu.pipeline_mode<synchronous>, transform_indices = @transform_2, window_bounds = array<i64: 1, 128>}, {transform_indices = @transform_3, window_bounds = array<i64: 16, 128>}]} {
    %c0 = arith.constant 0 : index
    %c0_0 = arith.constant 0 : index
    %0 = vector.load %arg1[%c0, %c0_0] : memref<16x128xf32, #tpu.memory_space<vmem>>, vector<16x128xf32>
    %1 = arith.truncf %0 : vector<16x128xf32> to vector<16x128xbf16>
    %c0_1 = arith.constant 0 : index
    %c0_2 = arith.constant 0 : index
    %2 = vector.load %arg2[%c0_1, %c0_2] : memref<128x128xbf16, #tpu.memory_space<vmem>>, vector<128x128xbf16>
    %cst = arith.constant dense<0.000000e+00> : vector<16x128xf32>
    %3 = tpu.matmul %1, %2, %cst {dimension_numbers = #tpu.dot_dimension_numbers<[1], [0], [0], [1], [0, 0, 1, 1], [], []>} : vector<16x128xbf16>, vector<128x128xbf16>, vector<16x128xf32> -> vector<16x128xf32>
    %c0_3 = arith.constant 0 : index
    %c0_4 = arith.constant 0 : index
    %4 = vector.load %arg3[%c0_3, %c0_4] : memref<1x128xf32, #tpu.memory_space<vmem>>, vector<1x128xf32>
    %5 = vector.broadcast %4 : vector<1x128xf32> to vector<16x128xf32>
    %6 = arith.addf %3, %5 : vector<16x128xf32>
    %cst_5 = arith.constant 0.000000e+00 : f32
    %7 = vector.broadcast %cst_5 : f32 to vector<16x128xf32>
    %8 = arith.maximumf %6, %7 : vector<16x128xf32>
    %c0_6 = arith.constant 0 : index
    %c0_7 = arith.constant 0 : index
    %9 = vector.load %arg4[%c0_6, %c0_7] : memref<16x128xf32, #tpu.memory_space<vmem>>, vector<16x128xf32>
    tpu.vector_store %arg4[%c0_6, %c0_7], %8 {strides = array<i32>} : memref<16x128xf32, #tpu.memory_space<vmem>>, vector<16x128xf32>,
    return
  }
  func.func @transform_0(%arg0: i32) -> (i32, i32) {
    %c0_i32 = arith.constant 0 : i32
    %c0_i32_0 = arith.constant 0 : i32
    return %arg0, %c0_i32 : i32, i32
  }
  func.func @transform_1(%arg0: i32) -> (i32, i32) {
    %c0_i32 = arith.constant 0 : i32
    %c0_i32_0 = arith.constant 0 : i32
    %c0_i32_1 = arith.constant 0 : i32
    return %c0_i32, %c0_i32_0 : i32, i32
  }
  func.func @transform_2(%arg0: i32) -> (i32, i32) {
    %c0_i32 = arith.constant 0 : i32
    %c0_i32_0 = arith.constant 0 : i32
    %c0_i32_1 = arith.constant 0 : i32
    return %c0_i32, %c0_i32_0 : i32, i32
  }
  func.func @transform_3(%arg0: i32) -> (i32, i32) {
    %c0_i32 = arith.constant 0 : i32
    %c0_i32_0 = arith.constant 0 : i32
    return %arg0, %c0_i32 : i32, i32
  }
}

</mosaic_0001>

<bundles_post_ra>
// kernel: tpu_custom_call.1
= control target key start
LH: loop header
LB: loop body
LE: loop exit
PB: predicated region body
PF: predicated region fallthrough
CT: control target
= control target key end

     0   :  { %8 = vsyncpa [#allocation3], 0  ;;  %s327_s0 = inlined_call_operand.hbm [shape: f32[16,128], index: 0, kind: input, shape index: {}]   ;;  %s328_s1 = inlined_call_operand.hbm [shape: bf16[128,128], index: 1, kind: input, shape index: {}]   ;;  %s329_s2 = inlined_call_operand.vmem [shape: f32[1,128], index: 2, kind: input, shape index: {}]   ;;  %s330_s3 = inlined_call_operand.hbm [shape: f32[16,128], index: 3, kind: output, shape index: {}]  }
   0x1   :  { %9 = vsyncpa [#allocation6], 0 }
   0x2   :  { %10 = vsyncpa [#allocation4], 0  ;;  %s15_s14 = sshll.u32 %s327_s0, 4  ;;  %s282_s15 = smov [#allocation2]   ;;  %s16_s14 = int_to_ptr.hbm [resolvable:$true] %s15_s14 }
   0x3   :  { %s17_s16 = sshll.u32 %s282_s15, 4  ;;  %s28_s19 = sshll.u32 %s328_s1, 4  ;;  %s18_s16 = int_to_ptr.vmem [resolvable:$true] %s17_s16  ;;  %s29_s19 = int_to_ptr.hbm [resolvable:$true] %s28_s19 }
   0x4   :  { %s283_s20 = smov 128   ;;  %s284_s21 = smov 8  }
   0x5   :  { %23 = dma.hbm_to_vmem [thread:$0]  %s16_s14, 256, %s18_s16, [#allocation3], %s283_s20, %s283_s20, %s284_s21  }
   0x6   :  { %s285_s22 = smov [#allocation5]   ;;  %s286_s24 = smov 64  }
   0x7   :  { %s30_s23 = sshll.u32 %s285_s22, 4  ;;  %s287_s0 = smov 4   ;;  %s31_s23 = int_to_ptr.vmem [resolvable:$true] %s30_s23 }
   0x8   :  { %36 = dma.hbm_to_vmem [thread:$0]  %s29_s19, 1024, %s31_s23, [#allocation6], %s286_s24, %s286_s24, %s287_s0  }
   0x9   :  { %276 = dma.done.wait [#allocation3], 256  }
   0xa   :  { %277 = vsyncadd [#allocation3], 4294967040 }
   0xb   :  { %278 = dma.done.wait [#allocation6], 1024  }
   0xc   :  { %279 = vsyncadd [#allocation6], 4294966272  ;;  %v195_v0 = vld [vmem:[#allocation5 + $0x38] sm:$0xff]  ;;  %v194_v1 = vld [vmem:[#allocation5 + $0x30] sm:$0xff]  ;;  %s288_s26 = smov [#allocation7]   ;;  %s142_s30 = sshll.u32 %s330_s3, 4  ;;  %s143_s30 = int_to_ptr.hbm [resolvable:$true] %s142_s30 }
   0xd   :  { %118 = vmatpush.bf16.msra.mxu0 %v195_v0  ;;  %v193_v2 = vld [vmem:[#allocation5 + $0x28] sm:$0xff]  ;;  %v192_v3 = vld [vmem:[#allocation5 + $0x20] sm:$0xff]  ;;  %v191_v4 = vld [vmem:[#allocation5 + $0x18] sm:$0xff]  ;;  %s140_s27 = sshll.u32 %s288_s26, 4  ;;  %s141_s27 = int_to_ptr.vmem [resolvable:$true] %s140_s27 }
   0xe   :  { %v190_v5 = vld [vmem:[#allocation5 + $0x10] sm:$0xff]  ;;  %v189_v6 = vld [vmem:[#allocation5 + $0x8] sm:$0xff]  ;;  %v188_v7 = vld [vmem:[#allocation5] sm:$0xff] }
   0xf   :  { %v47_v8 = vld [vmem:[#allocation2] sm:$0xff]  ;;  %v48_v9 = vld [vmem:[#allocation2 + $0x8] sm:$0xff] }
  0x10   :  { %v49_v10 = vpack.c.bf16 %v48_v9, %v47_v8  ;;  %v203_v11 = vld [vmem:[%s329_s2] ss:$0 sm:$0xff] }
  0x11   :  { %119 = vmatpush.bf16.msra.mxu0 %v194_v1 }
  0x15   :  { %120 = vmatpush.bf16.msra.mxu0 %v193_v2 }
  0x19   :  { %121 = vmatpush.bf16.msra.mxu0 %v192_v3 }
  0x1d   :  { %122 = vmatpush.bf16.msra.mxu0 %v191_v4 }
  0x21   :  { %123 = vmatpush.bf16.msra.mxu0 %v190_v5 }
  0x25   :  { %124 = vmatpush.bf16.msra.mxu0 %v189_v6 }
  0x29   :  { %125 = vmatpush.bf16.msra.mxu0 %v188_v7 }
  0x2c   :  { %126 = vmatmul.bf16.vlgmr.msra.gmra.mxu0 %v49_v10 }
  0xa9   :  { %v127_v12 = vpop.f32.mrf.mxu0 }
  0xaa   :  { %v128_v13 = vadd.f32 %v203_v11, %v127_v12 }
  0xac   :  { %v132_v14 = vmax.f32 %v128_v13, 0.0 }
  0xae   :  { %134 = vst [vmem:[#allocation7] sm:$0xff] %v132_v14 }
  0xb1   :  { %v129_v15 = vpop.f32.mrf.mxu0 }
  0xb2   :  { %v130_v16 = vadd.f32 %v203_v11, %v129_v15 }
  0xb4   :  { %v133_v17 = vmax.f32 %v130_v16, 0.0 }
  0xb6   :  { %135 = vst [vmem:[#allocation7 + $0x8] sm:$0xff] %v133_v17 }
  0xb7   :  { %148 = dma.vmem_to_hbm [thread:$0]  %s141_s27, 256, %s143_s30, [#allocation4], %s283_s20, %s283_s20, %s284_s21  }
  0xb8   :  { %280 = dma.done.wait [#allocation4], 256  }
  0xb9   :  { %281 = vsyncadd [#allocation4], 4294967040 }
  0xba   :  { %153 = vsyncpa [#allocation3], 1 }
  0xbb   :  { %154 = vsyncpa [#allocation6], 1 }
  0xbc   :  { %155 = vsyncpa [#allocation4], 1 }

</bundles_post_ra>
